<compile_context>
chip_gen: v7x
topology: tpu7x:2x2x1
jax: 0.10.0
libtpu: 0.0.40
codegen_flags: <defaults>
</compile_context>

<pallas_src>
import jax
import jax.numpy as jnp
from jax.experimental import pallas as pl
from jax.experimental.pallas import tpu as pltpu


def _linear_tanh_kernel(x_ref, w_ref, b_ref, o_ref, acc_ref):
    """One (row-tile, col-tile, k-tile) grid step of y = tanh(x @ W + b).

    x_ref:   (tb, tk)          activation tile
    w_ref:   (tk, tn)          weight tile in (in, out) layout -> canonical MXU path
    b_ref:   (1, tn)           bias tile
    o_ref:   (tb, tn)          output tile (written on the last K step only)
    acc_ref: (tb, tn) f32 VMEM accumulator, resident across the K axis
    """
    k = pl.program_id(2)

    @pl.when(k == 0)
    def _init():
        # Fold the bias add into accumulator init (saves a full-tile VPU add).
        acc_ref[...] = jnp.broadcast_to(
            b_ref[...].astype(jnp.float32), acc_ref.shape
        )

    acc_ref[...] += jnp.dot(
        x_ref[...], w_ref[...], preferred_element_type=jnp.float32
    )

    @pl.when(k == pl.num_programs(2) - 1)
    def _finalize():
        o_ref[...] = jnp.tanh(acc_ref[...]).astype(o_ref.dtype)


def prepare_linear_tanh_params(weight, bias):
    """One-time (amortized) param prep: PyTorch (out, in) weight -> (in, out); 2-D bias."""
    w_io = jnp.asarray(weight).T            # (in_features, out_features)
    b2d = jnp.asarray(bias).reshape(1, -1)  # (1, out_features)
    return w_io, b2d


def _choose_tk(f_in, block_k):
    """Largest K tile <= block_k that evenly divides f_in (reduction must never see OOB)."""
    if f_in <= block_k:
        return f_in
    cand = (block_k // 128) * 128
    while cand >= 128:
        if f_in % cand == 0:
            return cand
        cand -= 128
    # TODO(synk): zero-pad K at parameter-prep time for large non-128-divisible in_features;
    # falling back to a single resident K block is correct but VMEM-heavy.
    return f_in


def linear_tanh_forward(
    x,
    w_io,
    bias2d,
    *,
    block_rows=256,
    block_cols=256,
    block_k=2048,
    use_bf16_matmul=False,
):
    """y = tanh(x @ w_io + bias).

    x:      (B, in_features)
    w_io:   (in_features, out_features)  -- prepared via prepare_linear_tanh_params
    bias2d: (1, out_features)
    """
    B, f_in = x.shape
    f_in_w, f_out = w_io.shape
    assert f_in_w == f_in, "weight/in_features mismatch"
    out_dtype = x.dtype

    # ---- tile sizes ---------------------------------------------------------
    # Row tile: full extent if batch is small, else sublane-aligned; ragged last
    # block is handled by Pallas (OOB writes clipped) -> no wrapper pad/slice.
    tb = B if B <= block_rows else max(8, (block_rows // 8) * 8)
    # Column tile: full extent if out_features is small, else lane-aligned (x128).
    tn = f_out if f_out <= block_cols else max(128, (block_cols // 128) * 128)
    # K tile: must evenly divide f_in so partial sums never include OOB padding.
    tk = _choose_tk(f_in, block_k)

    n_i = pl.cdiv(B, tb)
    n_j = pl.cdiv(f_out, tn)
    n_k = f_in // tk

    # Optional bf16 matmul inputs (f32 accumulate / bias / tanh stay in f32).
    if use_bf16_matmul:
        x_mm = x.astype(jnp.bfloat16)
        w_mm = w_io.astype(jnp.bfloat16)
    else:
        x_mm, w_mm = x, w_io

    x_isz = jnp.dtype(x_mm.dtype).itemsize
    w_isz = jnp.dtype(w_mm.dtype).itemsize
    b_isz = jnp.dtype(bias2d.dtype).itemsize
    o_isz = jnp.dtype(out_dtype).itemsize

    # VMEM budget for this tiling (double-buffered inputs/outputs + f32 accumulator).
    vmem_bytes = (
        2 * tb * tk * x_isz       # x tile
        + 2 * tk * tn * w_isz     # weight tile
        + 2 * 1 * tn * b_isz      # bias tile
        + 2 * tb * tn * o_isz     # output tile
        + tb * tn * 4             # accumulator scratch
    )
    vmem_limit = int(min(max(2 * vmem_bytes, 8 * 1024 * 1024), 64 * 1024 * 1024))

    cost = pl.CostEstimate(
        flops=2 * B * f_in * f_out,
        transcendentals=B * f_out,
        bytes_accessed=(
            x_mm.size * x_isz + w_mm.size * w_isz + bias2d.size * b_isz
            + B * f_out * o_isz
        ),
    )

    return pl.pallas_call(
        _linear_tanh_kernel,
        out_shape=jax.ShapeDtypeStruct((B, f_out), out_dtype),
        grid_spec=pltpu.PrefetchScalarGridSpec(
            num_scalar_prefetch=0,
            grid=(n_i, n_j, n_k),
            in_specs=[
                pl.BlockSpec((tb, tk), lambda i, j, k: (i, k)),   # x tile
                pl.BlockSpec((tk, tn), lambda i, j, k: (k, j)),   # weight (in, out) tile
                pl.BlockSpec((1, tn), lambda i, j, k: (0, j)),    # bias tile
            ],
            out_specs=pl.BlockSpec((tb, tn), lambda i, j, k: (i, j)),
            scratch_shapes=[pltpu.VMEM((tb, tn), jnp.float32)],
        ),
        compiler_params=pltpu.CompilerParams(
            dimension_semantics=("parallel", "parallel", "arbitrary"),
            vmem_limit_bytes=vmem_limit,
        ),
        cost_estimate=cost,
    )(x_mm, w_mm, bias2d)


if __name__ == "__main__":
    # Small shapes consistent with the module's forward, lane/sublane friendly:
    # batch multiple of 8, out_features multiple of 128 (unmasked vst stores).
    batch = 8
    in_features = 32
    out_features = 128

    key = jax.random.PRNGKey(0)
    kx, kw, kb = jax.random.split(key, 3)

    x = jax.random.normal(kx, (batch, in_features), dtype=jnp.float32)
    # Deterministic init mimicking nn.Linear default: U(-1/sqrt(fan_in), 1/sqrt(fan_in))
    bound = 1.0 / (in_features ** 0.5)
    weight = jax.random.uniform(
        kw, (out_features, in_features), dtype=jnp.float32, minval=-bound, maxval=bound
    )  # PyTorch nn.Linear layout (out, in)
    bias = jax.random.uniform(
        kb, (out_features,), dtype=jnp.float32, minval=-bound, maxval=bound
    )

    # One-time parameter prep (amortized across forwards).
    w_io, bias2d = prepare_linear_tanh_params(weight, bias)

    out = linear_tanh_forward(x, w_io, bias2d)
    jax.block_until_ready(out)

    # Reference check in plain JAX (same math as the PyTorch module).
    ref = jnp.tanh(x @ weight.T + bias)
    assert out.shape == (batch, out_features)
    assert jnp.allclose(out, ref, atol=1e-5, rtol=1e-5)

    print("KERNEL_OK")
</pallas_src>

<mosaic_0001>
module attributes {stable_mosaic.version = 11 : i64} {
  func.func @_linear_tanh_kernel(%arg0: i32, %arg1: i32, %arg2: i32, %arg3: memref<8x32xf32, #tpu.memory_space<vmem>>, %arg4: memref<32x128xf32, #tpu.memory_space<vmem>>, %arg5: memref<1x128xf32, #tpu.memory_space<vmem>>, %arg6: memref<8x128xf32, #tpu.memory_space<vmem>>, %arg7: memref<8x128xf32, #tpu.memory_space<vmem>>) attributes {dimension_semantics = [#tpu.dimension_semantics<parallel>, #tpu.dimension_semantics<parallel>, #tpu.dimension_semantics<arbitrary>], iteration_bounds = array<i64: 1, 1, 1>, scalar_prefetch = 0 : i64, scratch_operands = 1 : i64, tpu.core_type = #tpu.core_type<tc>, window_params = [{transform_indices = @transform_0, window_bounds = array<i64: 8, 32>}, {transform_indices = @transform_1, window_bounds = array<i64: 32, 128>}, {transform_indices = @transform_2, window_bounds = array<i64: 1, 128>}, {transform_indices = @transform_3, window_bounds = array<i64: 8, 128>}]} {
    %c0_i32 = arith.constant 0 : i32
    %0 = arith.cmpi eq, %arg2, %c0_i32 : i32
    %1 = arith.extui %0 : i1 to i32
    %c0_i32_0 = arith.constant 0 : i32
    %2 = arith.cmpi ne, %1, %c0_i32_0 : i32
    scf.if %2 {
      %c0_10 = arith.constant 0 : index
      %c0_11 = arith.constant 0 : index
      %12 = vector.load %arg5[%c0_10, %c0_11] : memref<1x128xf32, #tpu.memory_space<vmem>>, vector<1x128xf32>
      %13 = vector.shape_cast %12 : vector<1x128xf32> to vector<1x128xf32>
      %14 = vector.broadcast %13 : vector<1x128xf32> to vector<8x128xf32>
      %c0_12 = arith.constant 0 : index
      %c0_13 = arith.constant 0 : index
      %15 = vector.load %arg7[%c0_12, %c0_13] : memref<8x128xf32, #tpu.memory_space<vmem>>, vector<8x128xf32>
      tpu.vector_store %arg7[%c0_12, %c0_13], %14 {strides = array<i32>} : memref<8x128xf32, #tpu.memory_space<vmem>>, vector<8x128xf32>,
    } else {
    }
    %c0 = arith.constant 0 : index
    %c0_1 = arith.constant 0 : index
    %3 = vector.load %arg7[%c0, %c0_1] : memref<8x128xf32, #tpu.memory_space<vmem>>, vector<8x128xf32>
    %c0_2 = arith.constant 0 : index
    %c0_3 = arith.constant 0 : index
    %4 = vector.load %arg3[%c0_2, %c0_3] : memref<8x32xf32, #tpu.memory_space<vmem>>, vector<8x32xf32>
    %c0_4 = arith.constant 0 : index
    %c0_5 = arith.constant 0 : index
    %5 = vector.load %arg4[%c0_4, %c0_5] : memref<32x128xf32, #tpu.memory_space<vmem>>, vector<32x128xf32>
    %cst = arith.constant dense<0.000000e+00> : vector<8x128xf32>
    %6 = tpu.matmul %4, %5, %cst {dimension_numbers = #tpu.dot_dimension_numbers<[1], [0], [0], [1], [0, 0, 1, 1], [], []>} : vector<8x32xf32>, vector<32x128xf32>, vector<8x128xf32> -> vector<8x128xf32>
    %7 = arith.addf %3, %6 : vector<8x128xf32>
    %c0_6 = arith.constant 0 : index
    %c0_7 = arith.constant 0 : index
    %8 = vector.load %arg7[%c0_6, %c0_7] : memref<8x128xf32, #tpu.memory_space<vmem>>, vector<8x128xf32>
    tpu.vector_store %arg7[%c0_6, %c0_7], %7 {strides = array<i32>} : memref<8x128xf32, #tpu.memory_space<vmem>>, vector<8x128xf32>,
    %c0_i32_8 = arith.constant 0 : i32
    %9 = arith.cmpi eq, %arg2, %c0_i32_8 : i32
    %10 = arith.extui %9 : i1 to i32
    %c0_i32_9 = arith.constant 0 : i32
    %11 = arith.cmpi ne, %10, %c0_i32_9 : i32
    scf.if %11 {
      %c0_10 = arith.constant 0 : index
      %c0_11 = arith.constant 0 : index
      %12 = vector.load %arg7[%c0_10, %c0_11] : memref<8x128xf32, #tpu.memory_space<vmem>>, vector<8x128xf32>
      %13 = math.tanh %12 : vector<8x128xf32>
      %c0_12 = arith.constant 0 : index
      %c0_13 = arith.constant 0 : index
      %14 = vector.load %arg6[%c0_12, %c0_13] : memref<8x128xf32, #tpu.memory_space<vmem>>, vector<8x128xf32>
      tpu.vector_store %arg6[%c0_12, %c0_13], %13 {strides = array<i32>} : memref<8x128xf32, #tpu.memory_space<vmem>>, vector<8x128xf32>,
    } else {
    }
    return
  }
  func.func @transform_0(%arg0: i32, %arg1: i32, %arg2: i32) -> (i32, i32) {
    %c0_i32 = arith.constant 0 : i32
    return %arg0, %arg2 : i32, i32
  }
  func.func @transform_1(%arg0: i32, %arg1: i32, %arg2: i32) -> (i32, i32) {
    %c0_i32 = arith.constant 0 : i32
    return %arg2, %arg1 : i32, i32
  }
  func.func @transform_2(%arg0: i32, %arg1: i32, %arg2: i32) -> (i32, i32) {
    %c0_i32 = arith.constant 0 : i32
    %c0_i32_0 = arith.constant 0 : i32
    return %c0_i32, %arg1 : i32, i32
  }
  func.func @transform_3(%arg0: i32, %arg1: i32, %arg2: i32) -> (i32, i32) {
    %c0_i32 = arith.constant 0 : i32
    return %arg0, %arg1 : i32, i32
  }
}

</mosaic_0001>

<bundles_post_ra>
// kernel: tpu_custom_call.1
= control target key start
LH: loop header
LB: loop body
LE: loop exit
PB: predicated region body
PF: predicated region fallthrough
CT: control target
= control target key end

     0   :  { %8 = vsyncpa [#allocation4], 0  ;;  %s337_s0 = inlined_call_operand.hbm [shape: f32[8,32], index: 0, kind: input, shape index: {}]   ;;  %s338_s1 = inlined_call_operand.hbm [shape: f32[32,128], index: 1, kind: input, shape index: {}]   ;;  %s339_s2 = inlined_call_operand.vmem [shape: f32[1,128], index: 2, kind: input, shape index: {}]   ;;  %s340_s3 = inlined_call_operand.hbm [shape: f32[8,128], index: 3, kind: output, shape index: {}]  }
   0x1   :  { %9 = vsyncpa [#allocation7], 0 }
   0x2   :  { %10 = vsyncpa [#allocation5], 0  ;;  %s263_s12 = smov [#allocation3]   ;;  %s264_s14 = smov [#allocation6]  }
   0x3   :  { %s17_s13 = sshll.u32 %s263_s12, 4  ;;  %s26_s15 = sshll.u32 %s264_s14, 4  ;;  %s18_s13 = int_to_ptr.vmem [resolvable:$true] %s17_s13  ;;  %s291_s15 = int_to_ptr.vmem [resolvable:$true] %s26_s15 }
   0x4   :  { %s191_s18 = scalar_lea.hbm %s337_s0, 128 }
   0x5   :  { %p192_p0 = scmp.ne.s32.totalorder %s337_s0, %s191_s18  ;;  %p195_p1 = scmp.lt.u32.totalorder %s191_s18, %s337_s0 }
   0x7   :  { %p197_p2 = pnand %p195_p1, %p192_p0 }
   0x9   :  { %200 = shalt.err (!%p197_p2)
}
   0xa   :  { %s201_s23 = scalar_lea.vmem %s18_s13, 128  ;;  %p206_p4 = scmp.lt.s32.totalorder %s18_s13, %s18_s13 }
   0xb   :  { %p202_p3 = scmp.ne.s32.totalorder %s18_s13, %s201_s23  ;;  %p207_p5 = scmp.lt.s32.totalorder %s201_s23, %s201_s23 }
   0xd   :  { %p208_p6 = por %p207_p5, %p206_p4 }
   0xf   :  { %p209_p7 = pnand %p208_p6, %p202_p3 }
  0x11   :  { %212 = shalt.err (!%p209_p7)
}
  0x12   :  { %20 = dma.hbm_to_vmem [thread:$0]  %s337_s0, 128, %s18_s13, [#allocation4]  }
  0x13   :  { %s213_s28 = scalar_lea.hbm %s338_s1, 512 }
  0x14   :  { %p214_p8 = scmp.ne.s32.totalorder %s338_s1, %s213_s28  ;;  %p217_p9 = scmp.lt.u32.totalorder %s213_s28, %s338_s1 }
  0x16   :  { %p219_p10 = pnand %p217_p9, %p214_p8 }
  0x18   :  { %222 = shalt.err (!%p219_p10)
}
  0x19   :  { %s223_s6 = scalar_lea.vmem %s291_s15, 512  ;;  %p228_p12 = scmp.lt.s32.totalorder %s291_s15, %s291_s15 }
  0x1a   :  { %p224_p11 = scmp.ne.s32.totalorder %s291_s15, %s223_s6  ;;  %p229_p13 = scmp.lt.s32.totalorder %s223_s6, %s223_s6 }
  0x1c   :  { %p230_p0 = por %p229_p13, %p228_p12 }
  0x1e   :  { %p231_p1 = pnand %p230_p0, %p224_p11 }
  0x20   :  { %234 = shalt.err (!%p231_p1)
}
  0x21   :  { %s265_s0 = smov 128   ;;  %s266_s7 = smov 8  }
  0x22   :  { %32 = dma.hbm_to_vmem [thread:$0]  %s338_s1, 512, %s291_s15, [#allocation7], %s265_s0, %s265_s0, %s266_s7  }
  0x23   :  { %257 = dma.done.wait [#allocation4], 128  }
  0x24   :  { %258 = vsyncadd [#allocation4], 4294967168 }
  0x25   :  { %259 = dma.done.wait [#allocation7], 512  }
  0x26   :  { %260 = vsyncadd [#allocation7], 4294966784  ;;  %v267_v0 = vmov 0.0|0.0   ;;  %vm268_vm0 = vmmov 0   ;;  %v269_v1 = vmov 0.0   ;;  %v55_v2 = vld [vmem:[#allocation6] sm:$0xff] }
  0x27   :  { %175 = vmatprep.subr.bf16.mxu0 %v267_v0  ;;  %172 = vmatprep.mubr.msk.f32.mxu0 %vm268_vm0, %v269_v1  ;;  %v56_v3 = vld [vmem:[#allocation6 + $0x8] sm:$0xff]  ;;  %v57_v4 = vld [vmem:[#allocation6 + $0x10] sm:$0xff]  ;;  %v58_v6 = vld [vmem:[#allocation6 + $0x18] sm:$0xff]  ;;  %vm59_vm1 = vcmask 261120   ;;  %s270_s11 = smov [#allocation8]  }
  0x28   :  { %v176_v5 = vpack.c.bf16 %v56_v3, %v55_v2  ;;  %v179_v7 = vpack.c.bf16 %v58_v6, %v57_v4  ;;  %v54_v8 = vld [vmem:[#allocation3] sm:$0xff]  ;;  %s147_s12 = sshll.u32 %s270_s11, 4  ;;  %s148_s12 = int_to_ptr.vmem [resolvable:$true] %s147_s12 }
  0x29   :  { %v157_v9 = vld [vmem:[%s339_s2] ss:$0 sm:$0xff]  ;;  %s235_s13 = scalar_lea.vmem %s148_s12, 128  ;;  %p240_p3 = scmp.lt.s32.totalorder %s148_s12, %s148_s12 }
  0x2a   :  { %177 = vmatpush3.bf16.msra.mxu0 %v176_v5  ;;  %p236_p2 = scmp.ne.s32.totalorder %s148_s12, %s235_s13  ;;  %p241_p4 = scmp.lt.s32.totalorder %s235_s13, %s235_s13 }
  0x2b   :  { %178 = vmatprep.subr.bf16.mxu0 %v267_v0 }
  0x2c   :  { %p242_p5 = por %p241_p4, %p240_p3 }
  0x2e   :  { %180 = vmatpush3.bf16.msra.mxu0 %v179_v7  ;;  %p243_p6 = pnand %p242_p5, %p236_p2 }
  0x31   :  { %173 = vmatmul.mubr.msk.f32.vlgmr.msra.gmra.mrb[0].mxu0 %vm59_vm1, %v54_v8 }
 0x104   :  { %v129_v10 = vpop.f32.mrb[0].mxu0 }
 0x105   :  { %v133_v11 = vadd.f32 %v157_v9, %v129_v10  ;;  %v174_v12 = vpop.f32.mrb[1].mxu0 }
 0x107   :  { %189 = vtanh.f32 %v133_v11 }
 0x111   :  { %v190_v13 = vpop.eup %189 }
 0x112   :  { %140 = vst [vmem:[#allocation8] sm:$0xff] %v190_v13 }
 0x113   :  { %246 = shalt.err (!%p243_p6)
}
 0x114   :  { %s247_s2 = scalar_lea.hbm %s340_s3, 128 }
 0x115   :  { %p248_p7 = scmp.ne.s32.totalorder %s340_s3, %s247_s2  ;;  %p251_p8 = scmp.lt.u32.totalorder %s247_s2, %s340_s3 }
 0x117   :  { %p253_p9 = pnand %p251_p8, %p248_p7 }
 0x119   :  { %256 = shalt.err (!%p253_p9)
}
 0x11a   :  { %150 = dma.vmem_to_hbm [thread:$0]  %s148_s12, 128, %s340_s3, [#allocation5]  }
 0x11b   :  { %261 = dma.done.wait [#allocation5], 128  }
 0x11c   :  { %262 = vsyncadd [#allocation5], 4294967168 }
 0x11d   :  { %154 = vsyncpa [#allocation4], 1 }
 0x11e   :  { %155 = vsyncpa [#allocation7], 1 }
 0x11f   :  { %156 = vsyncpa [#allocation5], 1 }

</bundles_post_ra>
